<compile_context>
chip_gen: v6e
topology: v6e:2x2x1
jax: 0.10.0
libtpu: 0.0.40
codegen_flags: <defaults>
</compile_context>

<pallas_src>
import math
import functools

import jax
import jax.numpy as jnp
from jax.experimental import pallas as pl
from jax.experimental.pallas import tpu as pltpu


# ----------------------------- config ---------------------------------------
B = 2          # batch
T = 8          # sequence length
N_EMBD = 32    # embedding dim
N_HEADS = 4    # attention heads
HEAD_DIM = N_EMBD // N_HEADS
LN_EPS = 1e-5
NEG_BIG = -1e30   # finite large-negative mask value (avoids inf/NaN pitfalls)


# --------------------- small integer helpers (kernel-safe) -------------------
def _idiv(x, d):
    """x // d for non-negative int32 x, positive Python int d (shift if pow2)."""
    if d & (d - 1) == 0:
        return jnp.right_shift(x, d.bit_length() - 1)
    return jax.lax.div(x, jnp.int32(d))


def _imod(x, d):
    """x % d for non-negative int32 x, positive Python int d (mask if pow2)."""
    if d & (d - 1) == 0:
        return jnp.bitwise_and(x, d - 1)
    return jax.lax.rem(x, jnp.int32(d))


# ----------------------------- kernel ---------------------------------------
def _block_kernel(x_ref, pslab_ref, w_ref, o_ref, *, n_heads, seq_len):
    # Entire problem in one invocation: x is (R, N) with R = B*T.
    x = x_ref[...]                       # (R, N)
    r, n = x.shape
    hd = n // n_heads
    hr = n_heads * r
    inv_scale = 1.0 / math.sqrt(hd)

    # ---- unpack fused param slab (static lane slices of one resident tile) --
    pslab = pslab_ref[...]               # (4, 4N)
    ln1g = pslab[0:1, 0:n]
    ln1b = pslab[0:1, n:2 * n]
    ln2g = pslab[0:1, 2 * n:3 * n]
    ln2b = pslab[0:1, 3 * n:4 * n]
    bqkv = pslab[1:2, 0:3 * n]
    bpr = pslab[1:2, 3 * n:4 * n]
    bfc = pslab[2:3, 0:4 * n]
    bp2 = pslab[3:4, 0:n]

    w = w_ref[...]                       # (N, 12N)
    wqkv = w[:, 0:3 * n]                 # (N, 3N)
    wpr = w[:, 3 * n:4 * n]              # (N, N)
    wfc = w[:, 4 * n:8 * n]              # (N, 4N)
    wp2t = w[:, 8 * n:12 * n]            # (N, 4N) == wp2.T

    # ---- LayerNorm 1 ----
    mu = jnp.mean(x, axis=-1, keepdims=True)
    xc = x - mu
    var = jnp.mean(xc * xc, axis=-1, keepdims=True)
    h = xc * jax.lax.rsqrt(var + LN_EPS) * ln1g + ln1b

    # ---- fused QKV projection (single MXU push) ----
    qkv = jnp.dot(h, wqkv, preferred_element_type=jnp.float32) + bqkv
    q = qkv[:, 0:n] * inv_scale          # fold 1/sqrt(hd) into q
    k = qkv[:, n:2 * n]
    v = qkv[:, 2 * n:3 * n]

    # ---- block-diagonal head packing (all 2-D, lane-dense) ------------------
    # head_mask[j, d] = 1  iff  (j // R) == (d // hd)      shape (HR, N)
    row_i = jax.lax.broadcasted_iota(jnp.int32, (hr, n), 0)
    col_i = jax.lax.broadcasted_iota(jnp.int32, (hr, n), 1)
    head_mask = jnp.where(_idiv(row_i, r) == _idiv(col_i, hd), 1.0, 0.0)

    k_bd = jnp.concatenate([k] * n_heads, axis=0) * head_mask   # (HR, N)
    v_bd = jnp.concatenate([v] * n_heads, axis=0) * head_mask   # (HR, N)

    # scores for all heads in ONE 2-D contraction (K = N): (R, HR)
    s = jax.lax.dot_general(q, k_bd, (((1,), (1,)), ((), ())),
                            preferred_element_type=jnp.float32)

    # in-kernel block-diagonal causal mask (same-batch AND not-future)
    qr = jax.lax.broadcasted_iota(jnp.int32, (r, hr), 0)     # query flat row
    kc = jax.lax.broadcasted_iota(jnp.int32, (r, hr), 1)     # packed column
    ks = _imod(kc, r)                                        # key flat row
    valid = (_idiv(qr, seq_len) == _idiv(ks, seq_len)) & (qr >= ks)
    s = jnp.where(valid, s, NEG_BIG)

    # softmax with global per-row max (masked entries underflow to exactly 0;
    # scores are tiny here so a per-head max is not required for stability)
    m = jnp.max(s, axis=-1, keepdims=True)
    p = jnp.exp(s - m)                                       # (R, HR)

    # PV and per-head denominators: two 2-D matmuls, no head slicing
    y_un = jnp.dot(p, v_bd, preferred_element_type=jnp.float32)       # (R, N)
    denom = jnp.dot(p, head_mask, preferred_element_type=jnp.float32)  # (R, N)
    y = y_un * pl.reciprocal(denom, approx=True)                       # EUP slot

    att = jnp.dot(y, wpr, preferred_element_type=jnp.float32) + bpr

    # ---- first residual ----
    x1 = x + att

    # ---- LayerNorm 2 ----
    mu2 = jnp.mean(x1, axis=-1, keepdims=True)
    x1c = x1 - mu2
    var2 = jnp.mean(x1c * x1c, axis=-1, keepdims=True)
    h2 = x1c * jax.lax.rsqrt(var2 + LN_EPS) * ln2g + ln2b

    # ---- MLP: Linear -> GELU(tanh) -> Linear ----
    u = jnp.dot(h2, wfc, preferred_element_type=jnp.float32) + bfc
    c = math.sqrt(2.0 / math.pi)
    g = 0.5 * u * (1.0 + jnp.tanh(c * (u + 0.044715 * u * u * u)))
    mlp = jax.lax.dot_general(g, wp2t, (((1,), (1,)), ((), ())),
                              preferred_element_type=jnp.float32) + bp2

    # ---- second residual + direct store ----
    o_ref[...] = x1 + mlp


# ----------------------------- wrapper ---------------------------------------
@jax.jit
def block_forward(x, pslab, wslab):
    """x: (B, T, N) float32; pslab (4, 4N); wslab (N, 12N).
    Returns (out, kv_cache=None)."""
    b, t, n = x.shape
    r = b * t
    x2d = x.reshape(r, n)

    kernel = functools.partial(_block_kernel, n_heads=N_HEADS, seq_len=t)

    out2d = pl.pallas_call(
        kernel,
        out_shape=jax.ShapeDtypeStruct((r, n), jnp.float32),
        grid_spec=pltpu.PrefetchScalarGridSpec(
            num_scalar_prefetch=0,
            grid=(1,),                       # whole problem fits VMEM at toy size
            in_specs=[
                pl.BlockSpec(x2d.shape, lambda i: (0, 0)),
                pl.BlockSpec(pslab.shape, lambda i: (0, 0)),
                pl.BlockSpec(wslab.shape, lambda i: (0, 0)),
            ],
            out_specs=pl.BlockSpec((r, n), lambda i: (0, 0)),
        ),
        compiler_params=pltpu.CompilerParams(
            dimension_semantics=("arbitrary",)),
    )(x2d, pslab, wslab)

    out = out2d.reshape(b, t, n)
    # TODO(synk): kv_cache / input_pos (index_copy_) decode path not implemented.
    return out, None


# ----------------------------- param packing ---------------------------------
def pack_params(params):
    """One-time packing of the 12 natural params into 2 slabs (fewer DMAs)."""
    (ln1g, ln1b, wqkv, bqkv, wpr, bpr, ln2g, ln2b, wfc, bfc, wp2, bp2) = params
    n = ln1g.shape[-1]
    row0 = jnp.concatenate([ln1g.reshape(-1), ln1b.reshape(-1),
                            ln2g.reshape(-1), ln2b.reshape(-1)])       # (4N,)
    row1 = jnp.concatenate([bqkv.reshape(-1), bpr.reshape(-1)])        # (4N,)
    row2 = bfc.reshape(-1)                                             # (4N,)
    row3 = jnp.concatenate([bp2.reshape(-1),
                            jnp.zeros((3 * n,), jnp.float32)])         # (4N,)
    pslab = jnp.stack([row0, row1, row2, row3], axis=0)                # (4, 4N)
    wslab = jnp.concatenate([wqkv, wpr, wfc, wp2.T], axis=1)           # (N, 12N)
    return pslab, wslab


# ----------------------------- reference (pure JAX) --------------------------
def block_reference(x, params):
    (ln1g, ln1b, wqkv, bqkv, wpr, bpr, ln2g, ln2b, wfc, bfc, wp2, bp2) = params
    b, t, n = x.shape
    hd = n // N_HEADS

    def ln(z, g, bta):
        mu = jnp.mean(z, -1, keepdims=True)
        var = jnp.mean((z - mu) ** 2, -1, keepdims=True)
        return (z - mu) / jnp.sqrt(var + LN_EPS) * g + bta

    h = ln(x, ln1g, ln1b)
    qkv = h @ wqkv + bqkv
    q, k, v = jnp.split(qkv, 3, axis=-1)
    q = q.reshape(b, t, N_HEADS, hd).transpose(0, 2, 1, 3)
    k = k.reshape(b, t, N_HEADS, hd).transpose(0, 2, 1, 3)
    v = v.reshape(b, t, N_HEADS, hd).transpose(0, 2, 1, 3)
    s = jnp.einsum("bhqd,bhkd->bhqk", q, k) / math.sqrt(hd)
    mask = jnp.tril(jnp.ones((t, t), bool))
    s = jnp.where(mask, s, -jnp.inf)
    p = jax.nn.softmax(s, axis=-1)
    y = jnp.einsum("bhqk,bhkd->bhqd", p, v).transpose(0, 2, 1, 3).reshape(b, t, n)
    x1 = x + (y @ wpr + bpr)
    h2 = ln(x1, ln2g, ln2b)
    u = h2 @ wfc + bfc
    c = math.sqrt(2.0 / math.pi)
    g = 0.5 * u * (1.0 + jnp.tanh(c * (u + 0.044715 * u ** 3)))
    return x1 + (g @ wp2 + bp2)


# ----------------------------- params init -----------------------------------
def init_params(key, n_embd):
    ks = jax.random.split(key, 8)
    s = 0.02
    ln1g = jnp.ones((1, n_embd), jnp.float32)
    ln1b = jnp.zeros((1, n_embd), jnp.float32)
    ln2g = jnp.ones((1, n_embd), jnp.float32)
    ln2b = jnp.zeros((1, n_embd), jnp.float32)
    # Linear weights stored pre-transposed as (in, out) for x @ W + b.
    wqkv = jax.random.normal(ks[0], (n_embd, 3 * n_embd), jnp.float32) * s
    bqkv = jax.random.normal(ks[1], (1, 3 * n_embd), jnp.float32) * s
    wpr = jax.random.normal(ks[2], (n_embd, n_embd), jnp.float32) * s
    bpr = jax.random.normal(ks[3], (1, n_embd), jnp.float32) * s
    wfc = jax.random.normal(ks[4], (n_embd, 4 * n_embd), jnp.float32) * s
    bfc = jax.random.normal(ks[5], (1, 4 * n_embd), jnp.float32) * s
    wp2 = jax.random.normal(ks[6], (4 * n_embd, n_embd), jnp.float32) * s
    bp2 = jax.random.normal(ks[7], (1, n_embd), jnp.float32) * s
    return (ln1g, ln1b, wqkv, bqkv, wpr, bpr, ln2g, ln2b, wfc, bfc, wp2, bp2)


# ----------------------------- main -------------------------------------------
if __name__ == "__main__":
    key = jax.random.PRNGKey(0)
    kx, kp = jax.random.split(key)
    x = jax.random.normal(kx, (B, T, N_EMBD), jnp.float32)
    params = init_params(kp, N_EMBD)
    pslab, wslab = pack_params(params)

    out, kv_cache = block_forward(x, pslab, wslab)
    out = jax.block_until_ready(out)

    ref = block_reference(x, params)
    assert out.shape == (B, T, N_EMBD)
    err = jnp.max(jnp.abs(out - ref))
    assert jnp.allclose(out, ref, atol=2e-3, rtol=2e-3), f"max abs err {err}"
    print("KERNEL_OK")
</pallas_src>

<mosaic_0001>
module attributes {stable_mosaic.version = 11 : i64} {
  func.func @_block_kernel(%arg0: i32, %arg1: memref<16x32xf32, #tpu.memory_space<vmem>>, %arg2: memref<4x128xf32, #tpu.memory_space<vmem>>, %arg3: memref<32x384xf32, #tpu.memory_space<vmem>>, %arg4: memref<16x32xf32, #tpu.memory_space<vmem>>) attributes {dimension_semantics = [#tpu.dimension_semantics<arbitrary>], iteration_bounds = array<i64: 1>, scalar_prefetch = 0 : i64, scratch_operands = 0 : i64, tpu.core_type = #tpu.core_type<tc>, window_params = [{pipeline_mode = #tpu.pipeline_mode<synchronous>, transform_indices = @transform_0, window_bounds = array<i64: 16, 32>}, {pipeline_mode = #tpu.pipeline_mode<synchronous>, transform_indices = @transform_1, window_bounds = array<i64: 4, 128>}, {pipeline_mode = #tpu.pipeline_mode<synchronous>, transform_indices = @transform_2, window_bounds = array<i64: 32, 384>}, {pipeline_mode = #tpu.pipeline_mode<synchronous>, transform_indices = @transform_3, window_bounds = array<i64: 16, 32>}]} {
    %c0 = arith.constant 0 : index
    %c0_0 = arith.constant 0 : index
    %0 = vector.load %arg1[%c0, %c0_0] : memref<16x32xf32, #tpu.memory_space<vmem>>, vector<16x32xf32>
    %c0_1 = arith.constant 0 : index
    %c0_2 = arith.constant 0 : index
    %1 = vector.load %arg2[%c0_1, %c0_2] : memref<4x128xf32, #tpu.memory_space<vmem>>, vector<4x128xf32>
    %2 = vector.extract_strided_slice %1 {offsets = [0, 0], sizes = [1, 32], strides = [1, 1]} : vector<4x128xf32> to vector<1x32xf32>
    %3 = vector.extract_strided_slice %1 {offsets = [0, 32], sizes = [1, 32], strides = [1, 1]} : vector<4x128xf32> to vector<1x32xf32>
    %4 = vector.extract_strided_slice %1 {offsets = [0, 64], sizes = [1, 32], strides = [1, 1]} : vector<4x128xf32> to vector<1x32xf32>
    %5 = vector.extract_strided_slice %1 {offsets = [0, 96], sizes = [1, 32], strides = [1, 1]} : vector<4x128xf32> to vector<1x32xf32>
    %6 = vector.extract_strided_slice %1 {offsets = [1, 0], sizes = [1, 96], strides = [1, 1]} : vector<4x128xf32> to vector<1x96xf32>
    %7 = vector.extract_strided_slice %1 {offsets = [1, 96], sizes = [1, 32], strides = [1, 1]} : vector<4x128xf32> to vector<1x32xf32>
    %8 = vector.extract_strided_slice %1 {offsets = [2, 0], sizes = [1, 128], strides = [1, 1]} : vector<4x128xf32> to vector<1x128xf32>
    %9 = vector.extract_strided_slice %1 {offsets = [3, 0], sizes = [1, 32], strides = [1, 1]} : vector<4x128xf32> to vector<1x32xf32>
    %c0_3 = arith.constant 0 : index
    %c0_4 = arith.constant 0 : index
    %10 = vector.load %arg3[%c0_3, %c0_4] : memref<32x384xf32, #tpu.memory_space<vmem>>, vector<32x384xf32>
    %11 = vector.extract_strided_slice %10 {offsets = [0, 0], sizes = [32, 96], strides = [1, 1]} : vector<32x384xf32> to vector<32x96xf32>
    %12 = vector.extract_strided_slice %10 {offsets = [0, 96], sizes = [32, 32], strides = [1, 1]} : vector<32x384xf32> to vector<32x32xf32>
    %13 = vector.extract_strided_slice %10 {offsets = [0, 128], sizes = [32, 128], strides = [1, 1]} : vector<32x384xf32> to vector<32x128xf32>
    %14 = vector.extract_strided_slice %10 {offsets = [0, 256], sizes = [32, 128], strides = [1, 1]} : vector<32x384xf32> to vector<32x128xf32>
    %cst = arith.constant dense<0.000000e+00> : vector<16xf32>
    %15 = vector.multi_reduction <add>, %0, %cst [1] : vector<16x32xf32> to vector<16xf32>
    %16 = vector.shape_cast %15 : vector<16xf32> to vector<16x1xf32>
    %cst_5 = arith.constant 3.200000e+01 : f32
    %17 = vector.broadcast %cst_5 : f32 to vector<16x1xf32>
    %18 = arith.divf %16, %17 : vector<16x1xf32>
    %19 = vector.broadcast %18 : vector<16x1xf32> to vector<16x32xf32>
    %20 = arith.subf %0, %19 : vector<16x32xf32>
    %21 = arith.mulf %20, %20 : vector<16x32xf32>
    %cst_6 = arith.constant dense<0.000000e+00> : vector<16xf32>
    %22 = vector.multi_reduction <add>, %21, %cst_6 [1] : vector<16x32xf32> to vector<16xf32>
    %23 = vector.shape_cast %22 : vector<16xf32> to vector<16x1xf32>
    %cst_7 = arith.constant 3.200000e+01 : f32
    %24 = vector.broadcast %cst_7 : f32 to vector<16x1xf32>
    %25 = arith.divf %23, %24 : vector<16x1xf32>
    %cst_8 = arith.constant 9.99999974E-6 : f32
    %26 = vector.broadcast %cst_8 : f32 to vector<16x1xf32>
    %27 = arith.addf %25, %26 : vector<16x1xf32>
    %28 = math.rsqrt %27 : vector<16x1xf32>
    %29 = vector.broadcast %28 : vector<16x1xf32> to vector<16x32xf32>
    %30 = arith.mulf %20, %29 : vector<16x32xf32>
    %31 = vector.broadcast %2 : vector<1x32xf32> to vector<16x32xf32>
    %32 = arith.mulf %30, %31 : vector<16x32xf32>
    %33 = vector.broadcast %3 : vector<1x32xf32> to vector<16x32xf32>
    %34 = arith.addf %32, %33 : vector<16x32xf32>
    %cst_9 = arith.constant dense<0.000000e+00> : vector<16x96xf32>
    %35 = tpu.matmul %34, %11, %cst_9 {dimension_numbers = #tpu.dot_dimension_numbers<[1], [0], [0], [1], [0, 0, 1, 1], [], []>} : vector<16x32xf32>, vector<32x96xf32>, vector<16x96xf32> -> vector<16x96xf32>
    %36 = vector.broadcast %6 : vector<1x96xf32> to vector<16x96xf32>
    %37 = arith.addf %35, %36 : vector<16x96xf32>
    %38 = vector.extract_strided_slice %37 {offsets = [0, 0], sizes = [16, 32], strides = [1, 1]} : vector<16x96xf32> to vector<16x32xf32>
    %cst_10 = arith.constant 0.353553385 : f32
    %39 = vector.broadcast %cst_10 : f32 to vector<16x32xf32>
    %40 = arith.mulf %38, %39 : vector<16x32xf32>
    %41 = vector.extract_strided_slice %37 {offsets = [0, 32], sizes = [16, 32], strides = [1, 1]} : vector<16x96xf32> to vector<16x32xf32>
    %42 = vector.extract_strided_slice %37 {offsets = [0, 64], sizes = [16, 32], strides = [1, 1]} : vector<16x96xf32> to vector<16x32xf32>
    %43 = tpu.iota {dimensions = array<i32: 0>} : vector<64x32xi32>
    %44 = tpu.iota {dimensions = array<i32: 1>} : vector<64x32xi32>
    %c4_i32 = arith.constant 4 : i32
    %45 = vector.broadcast %c4_i32 : i32 to vector<64x32xi32>
    %46 = arith.shrsi %43, %45 : vector<64x32xi32>
    %c3_i32 = arith.constant 3 : i32
    %47 = vector.broadcast %c3_i32 : i32 to vector<64x32xi32>
    %48 = arith.shrsi %44, %47 : vector<64x32xi32>
    %49 = arith.cmpi eq, %46, %48 : vector<64x32xi32>
    %cst_11 = arith.constant 1.000000e+00 : f32
    %cst_12 = arith.constant 0.000000e+00 : f32
    %50 = vector.broadcast %cst_11 : f32 to vector<64x32xf32>
    %51 = vector.broadcast %cst_12 : f32 to vector<64x32xf32>
    %52 = arith.select %49, %50, %51 : vector<64x32xi1>, vector<64x32xf32>
    %53 = tpu.concatenate %41, %41, %41, %41 in 0 : vector<16x32xf32>, vector<16x32xf32>, vector<16x32xf32>, vector<16x32xf32> -> vector<64x32xf32>
    %54 = arith.mulf %53, %52 : vector<64x32xf32>
    %55 = tpu.concatenate %42, %42, %42, %42 in 0 : vector<16x32xf32>, vector<16x32xf32>, vector<16x32xf32>, vector<16x32xf32> -> vector<64x32xf32>
    %56 = arith.mulf %55, %52 : vector<64x32xf32>
    %cst_13 = arith.constant dense<0.000000e+00> : vector<16x64xf32>
    %57 = tpu.matmul %40, %54, %cst_13 {dimension_numbers = #tpu.dot_dimension_numbers<[1], [1], [0], [0], [0, 0, 1, 0], [], []>} : vector<16x32xf32>, vector<64x32xf32>, vector<16x64xf32> -> vector<16x64xf32>
    %58 = tpu.iota {dimensions = array<i32: 0>} : vector<16x64xi32>
    %59 = tpu.iota {dimensions = array<i32: 1>} : vector<16x64xi32>
    %c15_i32 = arith.constant 15 : i32
    %60 = vector.broadcast %c15_i32 : i32 to vector<16x64xi32>
    %61 = arith.andi %59, %60 : vector<16x64xi32>
    %c3_i32_14 = arith.constant 3 : i32
    %62 = vector.broadcast %c3_i32_14 : i32 to vector<16x64xi32>
    %63 = arith.shrsi %58, %62 : vector<16x64xi32>
    %c3_i32_15 = arith.constant 3 : i32
    %64 = vector.broadcast %c3_i32_15 : i32 to vector<16x64xi32>
    %65 = arith.shrsi %61, %64 : vector<16x64xi32>
    %66 = arith.cmpi eq, %63, %65 : vector<16x64xi32>
    %67 = arith.cmpi sge, %58, %61 : vector<16x64xi32>
    %68 = arith.andi %66, %67 : vector<16x64xi1>
    %cst_16 = arith.constant -1.000000e+30 : f32
    %69 = vector.broadcast %cst_16 : f32 to vector<16x64xf32>
    %70 = arith.select %68, %57, %69 : vector<16x64xi1>, vector<16x64xf32>
    %cst_17 = arith.constant dense<0xFF800000> : vector<16xf32>
    %71 = vector.multi_reduction <maximumf>, %70, %cst_17 [1] : vector<16x64xf32> to vector<16xf32>
    %72 = vector.shape_cast %71 : vector<16xf32> to vector<16x1xf32>
    %73 = vector.broadcast %72 : vector<16x1xf32> to vector<16x64xf32>
    %74 = arith.subf %70, %73 : vector<16x64xf32>
    %75 = math.exp %74 : vector<16x64xf32>
    %cst_18 = arith.constant dense<0.000000e+00> : vector<16x32xf32>
    %76 = tpu.matmul %75, %56, %cst_18 {dimension_numbers = #tpu.dot_dimension_numbers<[1], [0], [0], [1], [0, 0, 1, 1], [], []>} : vector<16x64xf32>, vector<64x32xf32>, vector<16x32xf32> -> vector<16x32xf32>
    %cst_19 = arith.constant dense<0.000000e+00> : vector<16x32xf32>
    %77 = tpu.matmul %75, %52, %cst_19 {dimension_numbers = #tpu.dot_dimension_numbers<[1], [0], [0], [1], [0, 0, 1, 1], [], []>} : vector<16x64xf32>, vector<64x32xf32>, vector<16x32xf32> -> vector<16x32xf32>
    %78 = tpu.reciprocal %77 {approx = true} : vector<16x32xf32> -> vector<16x32xf32>
    %79 = arith.mulf %76, %78 : vector<16x32xf32>
    %cst_20 = arith.constant dense<0.000000e+00> : vector<16x32xf32>
    %80 = tpu.matmul %79, %12, %cst_20 {dimension_numbers = #tpu.dot_dimension_numbers<[1], [0], [0], [1], [0, 0, 1, 1], [], []>} : vector<16x32xf32>, vector<32x32xf32>, vector<16x32xf32> -> vector<16x32xf32>
    %81 = vector.broadcast %7 : vector<1x32xf32> to vector<16x32xf32>
    %82 = arith.addf %80, %81 : vector<16x32xf32>
    %83 = arith.addf %0, %82 : vector<16x32xf32>
    %cst_21 = arith.constant dense<0.000000e+00> : vector<16xf32>
    %84 = vector.multi_reduction <add>, %83, %cst_21 [1] : vector<16x32xf32> to vector<16xf32>
    %85 = vector.shape_cast %84 : vector<16xf32> to vector<16x1xf32>
    %cst_22 = arith.constant 3.200000e+01 : f32
    %86 = vector.broadcast %cst_22 : f32 to vector<16x1xf32>
    %87 = arith.divf %85, %86 : vector<16x1xf32>
    %88 = vector.broadcast %87 : vector<16x1xf32> to vector<16x32xf32>
    %89 = arith.subf %83, %88 : vector<16x32xf32>
    %90 = arith.mulf %89, %89 : vector<16x32xf32>
    %cst_23 = arith.constant dense<0.000000e+00> : vector<16xf32>
    %91 = vector.multi_reduction <add>, %90, %cst_23 [1] : vector<16x32xf32> to vector<16xf32>
    %92 = vector.shape_cast %91 : vector<16xf32> to vector<16x1xf32>
    %cst_24 = arith.constant 3.200000e+01 : f32
    %93 = vector.broadcast %cst_24 : f32 to vector<16x1xf32>
    %94 = arith.divf %92, %93 : vector<16x1xf32>
    %cst_25 = arith.constant 9.99999974E-6 : f32
    %95 = vector.broadcast %cst_25 : f32 to vector<16x1xf32>
    %96 = arith.addf %94, %95 : vector<16x1xf32>
    %97 = math.rsqrt %96 : vector<16x1xf32>
    %98 = vector.broadcast %97 : vector<16x1xf32> to vector<16x32xf32>
    %99 = arith.mulf %89, %98 : vector<16x32xf32>
    %100 = vector.broadcast %4 : vector<1x32xf32> to vector<16x32xf32>
    %101 = arith.mulf %99, %100 : vector<16x32xf32>
    %102 = vector.broadcast %5 : vector<1x32xf32> to vector<16x32xf32>
    %103 = arith.addf %101, %102 : vector<16x32xf32>
    %cst_26 = arith.constant dense<0.000000e+00> : vector<16x128xf32>
    %104 = tpu.matmul %103, %13, %cst_26 {dimension_numbers = #tpu.dot_dimension_numbers<[1], [0], [0], [1], [0, 0, 1, 1], [], []>} : vector<16x32xf32>, vector<32x128xf32>, vector<16x128xf32> -> vector<16x128xf32>
    %105 = vector.broadcast %8 : vector<1x128xf32> to vector<16x128xf32>
    %106 = arith.addf %104, %105 : vector<16x128xf32>
    %cst_27 = arith.constant 5.000000e-01 : f32
    %107 = vector.broadcast %cst_27 : f32 to vector<16x128xf32>
    %108 = arith.mulf %107, %106 : vector<16x128xf32>
    %cst_28 = arith.constant 4.471500e-02 : f32
    %109 = vector.broadcast %cst_28 : f32 to vector<16x128xf32>
    %110 = arith.mulf %109, %106 : vector<16x128xf32>
    %111 = arith.mulf %110, %106 : vector<16x128xf32>
    %112 = arith.mulf %111, %106 : vector<16x128xf32>
    %113 = arith.addf %106, %112 : vector<16x128xf32>
    %cst_29 = arith.constant 0.797884583 : f32
    %114 = vector.broadcast %cst_29 : f32 to vector<16x128xf32>
    %115 = arith.mulf %114, %113 : vector<16x128xf32>
    %116 = math.tanh %115 : vector<16x128xf32>
    %cst_30 = arith.constant 1.000000e+00 : f32
    %117 = vector.broadcast %cst_30 : f32 to vector<16x128xf32>
    %118 = arith.addf %117, %116 : vector<16x128xf32>
    %119 = arith.mulf %108, %118 : vector<16x128xf32>
    %cst_31 = arith.constant dense<0.000000e+00> : vector<16x32xf32>
    %120 = tpu.matmul %119, %14, %cst_31 {dimension_numbers = #tpu.dot_dimension_numbers<[1], [1], [0], [0], [0, 0, 1, 0], [], []>} : vector<16x128xf32>, vector<32x128xf32>, vector<16x32xf32> -> vector<16x32xf32>
    %121 = vector.broadcast %9 : vector<1x32xf32> to vector<16x32xf32>
    %122 = arith.addf %120, %121 : vector<16x32xf32>
    %123 = arith.addf %83, %122 : vector<16x32xf32>
    %c0_32 = arith.constant 0 : index
    %c0_33 = arith.constant 0 : index
    %124 = vector.load %arg4[%c0_32, %c0_33] : memref<16x32xf32, #tpu.memory_space<vmem>>, vector<16x32xf32>
    tpu.vector_store %arg4[%c0_32, %c0_33], %123 {strides = array<i32>} : memref<16x32xf32, #tpu.memory_space<vmem>>, vector<16x32xf32>,
    return
  }
  func.func @transform_0(%arg0: i32) -> (i32, i32) {
    %c0_i32 = arith.constant 0 : i32
    %c0_i32_0 = arith.constant 0 : i32
    %c0_i32_1 = arith.constant 0 : i32
    return %c0_i32, %c0_i32_0 : i32, i32
  }
  func.func @transform_1(%arg0: i32) -> (i32, i32) {
    %c0_i32 = arith.constant 0 : i32
    %c0_i32_0 = arith.constant 0 : i32
    %c0_i32_1 = arith.constant 0 : i32
    return %c0_i32, %c0_i32_0 : i32, i32
  }
  func.func @transform_2(%arg0: i32) -> (i32, i32) {
    %c0_i32 = arith.constant 0 : i32
    %c0_i32_0 = arith.constant 0 : i32
    %c0_i32_1 = arith.constant 0 : i32
    return %c0_i32, %c0_i32_0 : i32, i32
  }
  func.func @transform_3(%arg0: i32) -> (i32, i32) {
    %c0_i32 = arith.constant 0 : i32
    %c0_i32_0 = arith.constant 0 : i32
    %c0_i32_1 = arith.constant 0 : i32
    return %c0_i32, %c0_i32_0 : i32, i32
  }
}

</mosaic_0001>

<bundles_post_ra>
// kernel: block_forward.1
= control target key start
LH: loop header
LB: loop body
LE: loop exit
PB: predicated region body
PF: predicated region fallthrough
CT: control target
= control target key end

     0   :  { %8 = vsyncpa [#allocation3], 0  ;;  %s1637_s0 = inlined_call_operand.hbm [shape: f32[16,32], index: 0, kind: input, shape index: {}]   ;;  %s1638_s1 = inlined_call_operand.hbm [shape: f32[4,128], index: 1, kind: input, shape index: {}]   ;;  %s1639_s2 = inlined_call_operand.hbm [shape: f32[32,384], index: 2, kind: input, shape index: {}]   ;;  %s1640_s3 = inlined_call_operand.hbm [shape: f32[16,32], index: 3, kind: output, shape index: {}]  }
   0x1   :  { %9 = vsyncpa [#allocation6], 0 }
   0x2   :  { %10 = vsyncpa [#allocation4], 0  ;;  %s1287_s12 = smov [#allocation5]   ;;  %s1288_s14 = smov [#allocation2]  }
   0x3   :  { %s29_s13 = sshll.u32 %s1287_s12, 4  ;;  %s16_s15 = sshll.u32 %s1288_s14, 4  ;;  %s30_s13 = int_to_ptr.vmem [resolvable:$true] %s29_s13  ;;  %s17_s15 = int_to_ptr.vmem [resolvable:$true] %s16_s15 }
   0x4   :  { %s1209_s16 = scalar_lea.vmem %s30_s13, 64  ;;  %p1214_p1 = scmp.lt.s32.totalorder %s30_s13, %s30_s13 }
   0x5   :  { %p1210_p0 = scmp.ne.s32.totalorder %s30_s13, %s1209_s16  ;;  %p1215_p2 = scmp.lt.s32.totalorder %s1209_s16, %s1209_s16 }
   0x7   :  { %p1216_p3 = por %p1215_p2, %p1214_p1 }
   0x9   :  { %p1217_p4 = pnand %p1216_p3, %p1210_p0 }
   0xb   :  { %1220 = shalt.err (!%p1217_p4)
}
   0xc   :  { %32 = dma.hbm_to_vmem [thread:$0]  %s1638_s1, 64, %s30_s13, [#allocation6]  }
   0xd   :  { %s1229_s19 = scalar_lea.vmem %s17_s15, 256  ;;  %p1234_p6 = scmp.lt.s32.totalorder %s17_s15, %s17_s15 }
   0xe   :  { %p1230_p5 = scmp.ne.s32.totalorder %s17_s15, %s1229_s19  ;;  %p1235_p7 = scmp.lt.s32.totalorder %s1229_s19, %s1229_s19 }
  0x10   :  { %p1236_p8 = por %p1235_p7, %p1234_p6 }
  0x12   :  { %p1237_p9 = pnand %p1236_p8, %p1230_p5 }
  0x14   :  { %1240 = shalt.err (!%p1237_p9)
}
  0x15   :  { %s1289_s20 = smov 128   ;;  %s1290_s21 = smov 8  }
  0x16   :  { %22 = dma.hbm_to_vmem [thread:$0]  %s1637_s0, 256, %s17_s15, [#allocation3], %s1289_s20, %s1289_s20, %s1290_s21  }
  0x17   :  { %s1291_s24 = smov [#allocation7]  }
  0x18   :  { %s38_s25 = sshll.u32 %s1291_s24, 4  ;;  %s39_s25 = int_to_ptr.vmem [resolvable:$true] %s38_s25 }
  0x19   :  { %s1249_s1 = scalar_lea.vmem %s39_s25, 1536  ;;  %p1254_p11 = scmp.lt.s32.totalorder %s39_s25, %s39_s25 }
  0x1a   :  { %p1250_p10 = scmp.ne.s32.totalorder %s39_s25, %s1249_s1  ;;  %p1255_p12 = scmp.lt.s32.totalorder %s1249_s1, %s1249_s1 }
  0x1c   :  { %p1256_p13 = por %p1255_p12, %p1254_p11 }
  0x1e   :  { %p1257_p0 = pnand %p1256_p13, %p1250_p10 }
  0x20   :  { %1260 = shalt.err (!%p1257_p0)
}
  0x21   :  { %s1292_s26 = smov 384   ;;  %s1293_s27 = smov 24  }
  0x22   :  { %44 = dma.hbm_to_vmem [thread:$0]  %s1639_s2, 1536, %s39_s25, [#allocation6], %s1292_s26, %s1292_s26, %s1293_s27  }
  0x23   :  { %1281 = dma.done.wait [#allocation3], 256  }
  0x24   :  { %1282 = vsyncadd [#allocation3], 4294967040 }
  0x25   :  { %1283 = dma.done.wait [#allocation6], 1600  }
  0x26   :  { %1284 = vsyncadd [#allocation6], 4294965696  ;;  %vm69_vm0 = vcmask 261120   ;;  %v1332_v0 = vld [vmem:[#allocation2] sm:$0xff]  ;;  %v1334_v1 = vld [vmem:[#allocation2 + $0x8] sm:$0xff]  ;;  %v97_v4 = vlaneseq  ;;  %s1294_s0 = smov 96  }
  0x27   :  { %v70_v2 = vsel %vm69_vm0, %v1332_v0, 0.0  ;;  %v73_v3 = vsel %vm69_vm0, %v1334_v1, 0.0  ;;  %v1342_v6 = vld [vmem:[#allocation5] sm:$0xf]  ;;  %v1362_v19 = vld [vmem:[#allocation7 + $0x48] sm:$0xff]  ;;  %v1366_v20 = vld [vmem:[#allocation7 + $0x30] sm:$0xff] }
  0x28   :  { %71 = vadd.xlane.f32.xlu0 %v70_v2  ;;  %v1340_v5 = vshrl.u32 %v97_v4, 7  ;;  %1067 = vmatprep.subr.mxu0 %v1362_v19  ;;  %v1370_v21 = vld [vmem:[#allocation7 + $0x18] sm:$0xff]  ;;  %v1374_v22 = vld [vmem:[#allocation7] sm:$0xff]  ;;  %v1379_v24 = vand.u32 127, %v97_v4  ;;  %v1295_v38 = vmov 0.0   ;;  %s1296_s2 = smov 32  }
  0x29   :  { %1068 = vmatpush3.msra.mxu0 %v1362_v19  ;;  %s1297_s30 = smov 64   ;;  %vm437_vm14 = vcmask 523264   ;;  %s1299_s4 = smov [#allocation8]  }
  0x2a   :  { %v99_v7 = vsub.s32 0, %v1340_v5  ;;  %1069 = vmatprep.subr.mxu0 %v1366_v20  ;;  %v204_v23 = vadd.s32 56, %v1340_v5  ;;  %v203_v25 = vadd.s32 48, %v1340_v5  ;;  %v202_v26 = vadd.s32 40, %v1340_v5  ;;  %s972_s5 = sshll.u32 %s1299_s4, 4  ;;  %s973_s5 = int_to_ptr.vmem [resolvable:$true] %s972_s5 }
  0x2b   :  { %1070 = vmatpush3.msra.mxu0 %v1366_v20  ;;  %v201_v27 = vadd.s32 32, %v1340_v5  ;;  %v199_v28 = vadd.s32 16, %v1340_v5  ;;  %v215_v30 = vshra.s32 %v1379_v24, 3  ;;  %v200_v37 = vadd.s32 24, %v1340_v5  ;;  %s1261_s6 = scalar_lea.vmem %s973_s5, 256  ;;  %p1266_p2 = scmp.lt.s32.totalorder %s973_s5, %s973_s5 }
  0x2c   :  { %74 = vadd.xlane.f32.xlu0 %v73_v3  ;;  %v1346_v8 = vrot.slane %v1342_v6, %v99_v7  ;;  %1071 = vmatprep.subr.mxu0 %v1370_v21  ;;  %v214_v29 = vshra.s32 %v204_v23, 4  ;;  %v213_v31 = vshra.s32 %v203_v25, 4  ;;  %v212_v36 = vshra.s32 %v202_v26, 4  ;;  %p1262_p1 = scmp.ne.s32.totalorder %s973_s5, %s1261_s6  ;;  %p1267_p3 = scmp.lt.s32.totalorder %s1261_s6, %s1261_s6 }
  0x2d   :  { %1072 = vmatpush3.msra.mxu0 %v1370_v21  ;;  %v211_v32 = vshra.s32 %v201_v27, 4  ;;  %v209_v33 = vshra.s32 %v199_v28, 4  ;;  %v207_v41 = vshra.s32 %v1340_v5, 4  ;;  %v210_v46 = vshra.s32 %v200_v37, 4 }
  0x2e   :  { %1073 = vmatprep.subr.mxu0 %v1374_v22  ;;  %vm1386_vm1 = vcmp.eq.s32.totalorder %v214_v29, %v215_v30  ;;  %vm1390_vm2 = vcmp.eq.s32.totalorder %v213_v31, %v215_v30  ;;  %vm1420_vm5 = vcmp.eq.s32.totalorder %v212_v36, %v215_v30  ;;  %v1429_v48 = vadd.s32 8, %v1340_v5  ;;  %p1268_p4 = por %p1267_p3, %p1266_p2 }
  0x2f   :  { %1074 = vmatpush3.msra.mxu0 %v1374_v22  ;;  %v1397_v39 = vsel %vm1386_vm1, 1.0, %v1295_v38  ;;  %vm1399_vm3 = vcmp.eq.s32.totalorder %v211_v32, %v215_v30  ;;  %vm1410_vm4 = vcmp.eq.s32.totalorder %v209_v33, %v215_v30  ;;  %v1416_v44 = vsel %vm1390_vm2, 1.0, %v1295_v38 }
  0x30   :  { %v1408_v42 = vsel %vm1399_vm3, 1.0, %v1295_v38  ;;  %v1426_v47 = vsel %vm1410_vm4, 1.0, %v1295_v38  ;;  %vm1431_vm6 = vcmp.eq.s32.totalorder %v207_v41, %v215_v30  ;;  %v1439_v50 = vsel %vm1420_vm5, 1.0, %v1295_v38  ;;  %p1269_p5 = pnand %p1268_p4, %p1262_p1 }
  0x31   :  { %vm1443_vm7 = vcmp.eq.s32.totalorder %v210_v46, %v215_v30  ;;  %v208_v52 = vshra.s32 %v1429_v48, 4  ;;  %v1450_v53 = vsel %vm1431_vm6, 1.0, %v1295_v38 }
  0x32   :  { %v227_v54 = vsel %vm1443_vm7, 1.0, %v1295_v38 }
  0x33   :  { %vm1458_vm8 = vcmp.eq.s32.totalorder %v208_v52, %v215_v30 }
  0x34   :  { %v225_v56 = vsel %vm1458_vm8, 1.0, %v1295_v38 }
  0x42   :  { %104 = vrot.lane.b32.xlu0 %v1346_v8, %s1294_s0 }
  0x46   :  { %248 = vrot.lane.b32.xlu0 %v1408_v42, %s1296_s2 }
  0x4a   :  { %244 = vrot.lane.b32.xlu0 %v1426_v47, %s1296_s2 }
  0x4e   :  { %240 = vrot.lane.b32.xlu0 %v1450_v53, %s1296_s2 }
  0xb1   :  { %v72_v9 = vpop.xlane.xlu0 %71 }
  0xb2   :  { %v77_v10 = vmul.f32 0.03125, %v72_v9 }
  0xb4   :  { %v1351_v11 = vsub.f32 %v1332_v0, %v77_v10 }
  0xb5   :  { %v75_v12 = vpop.xlane.xlu0 %74 }
  0xb6   :  { %v78_v13 = vmul.f32 0.03125, %v75_v12  ;;  %v81_v14 = vmul.f32 %v1351_v11, %v1351_v11 }
  0xb8   :  { %v1356_v15 = vsub.f32 %v1334_v1, %v78_v13  ;;  %v83_v16 = vsel %vm69_vm0, %v81_v14, 0.0 }
  0xb9   :  { %84 = vadd.xlane.f32.xlu1 %v83_v16  ;;  %v105_v3 = vpop.permute.xlu0 %104  ;;  %v111_v16 = vsub.s32 1, %v1340_v5 }
  0xba   :  { %v82_v17 = vmul.f32 %v1356_v15, %v1356_v15 }
  0xbc   :  { %v86_v18 = vsel %vm69_vm0, %v82_v17, 0.0 }
  0xbd   :  { %87 = vadd.xlane.f32.xlu1 %v86_v18 }
  0xce   :  { %254 = vrot.lane.b32.xlu1 %v1397_v39, %s1296_s2 }
  0xd2   :  { %252 = vrot.lane.b32.xlu1 %v1416_v44, %s1296_s2 }
  0xd6   :  { %250 = vrot.lane.b32.xlu1 %v1439_v50, %s1296_s2 }
  0xda   :  { %246 = vrot.lane.b32.xlu1 %v227_v54, %s1296_s2 }
  0xde   :  { %242 = vrot.lane.b32.xlu1 %v225_v56, %s1296_s2 }
 0x142   :  { %v85_v57 = vpop.xlane.xlu1 %84 }
 0x143   :  { %v89_v58 = vmul.f32 0.03125, %v85_v57 }
 0x145   :  { %v91_v59 = vadd.f32 1e-05, %v89_v58 }
 0x146   :  { %v88_v60 = vpop.xlane.xlu1 %87 }
 0x147   :  { %1181 = vrsqrt.f32 %v91_v59  ;;  %v90_v61 = vmul.f32 0.03125, %v88_v60 }
 0x149   :  { %v92_v62 = vadd.f32 1e-05, %v90_v61 }
 0x14a   :  { %v255_v14 = vpop.permute.xlu1 %254 }
 0x14b   :  { %1183 = vrsqrt.f32 %v92_v62 }
 0x14e   :  { %v253_v17 = vpop.permute.xlu1 %252 }
 0x152   :  { %v251_v18 = vpop.permute.xlu1 %250 }
 0x154   :  { %v1182_v63 = vpop.eup %1181 }
 0x155   :  { %v95_v2 = vmul.f32 %v1182_v63, %v1351_v11  ;;  %v1474_v11 = vrot.slane %v1342_v6, %v111_v16 }
 0x156   :  { %v247_v31 = vpop.permute.xlu1 %246 }
 0x157   :  { %v101_v4 = vmul.f32 %v1346_v8, %v95_v2 }
 0x158   :  { %v1184_v7 = vpop.eup %1183 }
 0x159   :  { %v96_v9 = vmul.f32 %v1184_v7, %v1356_v15  ;;  %v107_v10 = vadd.f32 %v105_v3, %v101_v4  ;;  %v249_v15 = vpop.permute.xlu0 %248 }
 0x15a   :  { %v243_v38 = vpop.permute.xlu1 %242 }
 0x15b   :  { %v102_v12 = vmul.f32 %v1346_v8, %v96_v9  ;;  %1075 = vmatprep.mubr.msk.f32.mxu0 %vm69_vm0, %v107_v10 }
 0x15d   :  { %v108_v13 = vadd.f32 %v105_v3, %v102_v12  ;;  %v245_v33 = vpop.permute.xlu0 %244 }
 0x15f   :  { %1076 = vmatmul.mubr.msk.f32.vlgmr.msra.gmra.mxu0 %vm69_vm0, %v108_v13 }
 0x161   :  { %v241_v46 = vpop.permute.xlu0 %240 }
 0x21f   :  { %v1077_v23 = vpop.f32.mrf.mxu0 }
 0x220   :  { %v1477_v25 = vadd.f32 %v1077_v23, %v1474_v11 }
 0x221   :  { %v185_v26 = vpop.f32.mrf.mxu0 }
 0x222   :  { %v1480_v27 = vadd.f32 %v185_v26, %v1474_v11  ;;  %v271_v28 = vmul.f32 %v255_v14, %v1477_v25  ;;  %v269_v32 = vmul.f32 %v251_v18, %v1477_v25  ;;  %v267_v37 = vmul.f32 %v247_v31, %v1477_v25 }
 0x223   :  { %v265_v52 = vmul.f32 %v243_v38, %v1477_v25  ;;  %v195_v12 = vmul.f32 0.35355338, %v1477_v25  ;;  %v426_v31 = vshra.s32 %v1340_v5, 3 }
 0x224   :  { %326 = vrot.lane.b32.xlu1 %v271_v28, %s1294_s0  ;;  %v270_v29 = vmul.f32 %v253_v17, %v1480_v27  ;;  %v194_v30 = vmul.f32 0.35355338, %v1480_v27  ;;  %v268_v36 = vmul.f32 %v249_v15, %v1480_v27  ;;  %v266_v41 = vmul.f32 %v245_v33, %v1480_v27 }
 0x225   :  { %v264_v57 = vmul.f32 %v241_v46, %v1480_v27  ;;  %v425_v28 = vand.u32 15, %v1379_v24 }
 0x226   :  { %324 = vrot.lane.b32.xlu0 %v270_v29, %s1294_s0  ;;  %1094 = vmatprep.mubr.msk.f32.mxu1 %vm69_vm0, %v194_v30  ;;  %v427_v29 = vshra.s32 %v1429_v48, 3 }
 0x227   :  { %v428_v30 = vshra.s32 %v425_v28, 3  ;;  %vm432_vm10 = vcmp.ge.s32.totalorder %v1429_v48, %v425_v28  ;;  %vm431_vm12 = vcmp.ge.s32.totalorder %v1340_v5, %v425_v28 }
 0x228   :  { %322 = vrot.lane.b32.xlu1 %v269_v32, %s1294_s0 }
 0x229   :  { %vm430_vm9 = vcmp.eq.s32.totalorder %v427_v29, %v428_v30  ;;  %vm429_vm11 = vcmp.eq.s32.totalorder %v426_v31, %v428_v30 }
 0x22a   :  { %320 = vrot.lane.b32.xlu0 %v268_v36, %s1294_s0  ;;  %vm434_vm13 = vmand %vm430_vm9, %vm432_vm10 }
 0x22b   :  { %vm433_vm15 = vmand %vm429_vm11, %vm431_vm12 }
 0x22c   :  { %318 = vrot.lane.b32.xlu1 %v267_v37, %s1294_s0 }
 0x22e   :  { %316 = vrot.lane.b32.xlu0 %v266_v41, %s1294_s0 }
 0x230   :  { %314 = vrot.lane.b32.xlu1 %v265_v52, %s1294_s0 }
 0x232   :  { %312 = vrot.lane.b32.xlu0 %v264_v57, %s1294_s0 }
 0x234   :  { %286 = vrot.lane.b32.xlu1 %v1397_v39, %s1297_s30 }
 0x236   :  { %284 = vrot.lane.b32.xlu0 %v1416_v44, %s1297_s30 }
 0x238   :  { %282 = vrot.lane.b32.xlu1 %v1439_v50, %s1297_s30 }
 0x23a   :  { %280 = vrot.lane.b32.xlu0 %v1408_v42, %s1297_s30 }
 0x23c   :  { %278 = vrot.lane.b32.xlu1 %v227_v54, %s1297_s30 }
 0x23e   :  { %276 = vrot.lane.b32.xlu0 %v1426_v47, %s1297_s30 }
 0x240   :  { %274 = vrot.lane.b32.xlu1 %v225_v56, %s1297_s30 }
 0x242   :  { %272 = vrot.lane.b32.xlu0 %v1450_v53, %s1297_s30 }
 0x296   :  { %v327_v39 = vpop.permute.xlu1 %326 }
 0x297   :  { %1078 = vmatprep.subr.msk.mxu1 %vm69_vm0, %v327_v39 }
 0x298   :  { %1079 = vmatpush3.xpose.msk.msra.mxu1 %vm69_vm0, %v327_v39  ;;  %v325_v44 = vpop.permute.xlu0 %324 }
 0x299   :  { %1080 = vmatprep.subr.msk.mxu1 %vm69_vm0, %v325_v44 }
 0x29a   :  { %v323_v50 = vpop.permute.xlu1 %322 }
 0x29c   :  { %1081 = vmatpush3.xpose.msk.msra.mxu1 %vm69_vm0, %v325_v44  ;;  %v321_v42 = vpop.permute.xlu0 %320 }
 0x29d   :  { %1082 = vmatprep.subr.msk.mxu1 %vm69_vm0, %v323_v50 }
 0x29e   :  { %v319_v47 = vpop.permute.xlu1 %318 }
 0x2a0   :  { %1083 = vmatpush3.xpose.msk.msra.mxu1 %vm69_vm0, %v323_v50  ;;  %v317_v54 = vpop.permute.xlu0 %316 }
 0x2a1   :  { %1084 = vmatprep.subr.msk.mxu1 %vm69_vm0, %v321_v42 }
 0x2a2   :  { %v315_v53 = vpop.permute.xlu1 %314 }
 0x2a4   :  { %1085 = vmatpush3.xpose.msk.msra.mxu1 %vm69_vm0, %v321_v42  ;;  %v313_v56 = vpop.permute.xlu0 %312 }
 0x2a5   :  { %1086 = vmatprep.subr.msk.mxu1 %vm69_vm0, %v319_v47 }
 0x2a6   :  { %v287_v58 = vpop.permute.xlu1 %286 }
 0x2a7   :  { %v303_v59 = vmul.f32 %v287_v58, %v1477_v25 }
 0x2a8   :  { %1087 = vmatpush3.xpose.msk.msra.mxu1 %vm69_vm0, %v319_v47  ;;  %v285_v60 = vpop.permute.xlu0 %284 }
 0x2a9   :  { %472 = vrot.lane.b32.xlu0 %v303_v59, %s1297_s30  ;;  %1088 = vmatprep.subr.msk.mxu1 %vm69_vm0, %v317_v54  ;;  %v302_v10 = vmul.f32 %v285_v60, %v1480_v27 }
 0x2aa   :  { %v283_v61 = vpop.permute.xlu1 %282 }
 0x2ab   :  { %v301_v62 = vmul.f32 %v283_v61, %v1477_v25 }
 0x2ac   :  { %1089 = vmatpush3.xpose.msk.msra.mxu1 %vm69_vm0, %v317_v54  ;;  %v281_v63 = vpop.permute.xlu0 %280 }
 0x2ad   :  { %v300_v2 = vmul.f32 %v281_v63, %v1480_v27  ;;  %468 = vrot.lane.b32.xlu1 %v301_v62, %s1297_s30  ;;  %1090 = vmatprep.subr.msk.mxu1 %vm69_vm0, %v315_v53 }
 0x2ae   :  { %v279_v3 = vpop.permute.xlu1 %278 }
 0x2af   :  { %v299_v4 = vmul.f32 %v279_v3, %v1477_v25  ;;  %466 = vrot.lane.b32.xlu0 %v300_v2, %s1297_s30 }
 0x2b0   :  { %1091 = vmatpush3.xpose.msk.msra.mxu1 %vm69_vm0, %v315_v53  ;;  %v277_v7 = vpop.permute.xlu0 %276 }
 0x2b1   :  { %v298_v9 = vmul.f32 %v277_v7, %v1480_v27  ;;  %464 = vrot.lane.b32.xlu1 %v299_v4, %s1297_s30  ;;  %1092 = vmatprep.subr.msk.mxu1 %vm69_vm0, %v313_v56 }
 0x2b2   :  { %v275_v14 = vpop.permute.xlu1 %274 }
 0x2b3   :  { %462 = vrot.lane.b32.xlu0 %v298_v9, %s1297_s30  ;;  %v297_v41 = vmul.f32 %v275_v14, %v1477_v25  ;;  %v67_v14 = vld [vmem:[#allocation7 + $0x50] sm:$0xff] }
 0x2b4   :  { %1093 = vmatpush3.xpose.msk.msra.mxu1 %vm69_vm0, %v313_v56  ;;  %v273_v13 = vpop.permute.xlu0 %272 }
 0x2b5   :  { %470 = vrot.lane.b32.xlu1 %v302_v10, %s1297_s30  ;;  %v296_v48 = vmul.f32 %v273_v13, %v1480_v27 }
 0x2b7   :  { %1095 = vmatmul.mubr.msk.f32.vlgmr.msra.gmra.mxu1 %vm69_vm0, %v195_v12 }
 0x31b   :  { %v473_v16 = vpop.permute.xlu0 %472 }
 0x31c   :  { %1097 = vmatprep.subr.mxu0 %v473_v16 }
 0x31d   :  { %1098 = vmatpush3.msra.mxu0 %v473_v16  ;;  %v64_v16 = vld [vmem:[#allocation7 + $0x38] sm:$0xff] }
 0x31f   :  { %v469_v17 = vpop.permute.xlu1 %468 }
 0x321   :  { %v467_v15 = vpop.permute.xlu0 %466 }
 0x323   :  { %v465_v18 = vpop.permute.xlu1 %464 }
 0x325   :  { %v463_v26 = vpop.permute.xlu0 %462 }
 0x327   :  { %v471_v23 = vpop.permute.xlu1 %470 }
 0x328   :  { %1099 = vmatprep.subr.mxu0 %v471_v23 }
 0x329   :  { %1100 = vmatpush3.msra.mxu0 %v471_v23 }
 0x32a   :  { %1101 = vmatprep.subr.mxu0 %v469_v17 }
 0x32b   :  { %1102 = vmatpush3.msra.mxu0 %v469_v17  ;;  %v61_v17 = vld [vmem:[#allocation7 + $0x20] sm:$0xff] }
 0x32c   :  { %1103 = vmatprep.subr.mxu0 %v467_v15 }
 0x32d   :  { %1104 = vmatpush3.msra.mxu0 %v467_v15 }
 0x32e   :  { %1105 = vmatprep.subr.mxu0 %v465_v18 }
 0x32f   :  { %1106 = vmatpush3.msra.mxu0 %v465_v18  ;;  %v58_v18 = vld [vmem:[#allocation7 + $0x8] sm:$0xff] }
 0x330   :  { %1107 = vmatprep.subr.mxu0 %v463_v26 }
 0x331   :  { %1108 = vmatpush3.msra.mxu0 %v463_v26 }
 0x377   :  { %v1096_v32 = vpop.f32.mrf.mxu1 }
 0x378   :  { %v436_v33 = vsel %vm434_vm13, %v1096_v32, -1e+30 }
 0x379   :  { %v416_v36 = vpop.f32.mrf.mxu1  ;;  %v441_v37 = vsel %vm437_vm14, %v436_v33, -inf }
 0x37a   :  { %v435_v24 = vsel %vm433_vm15, %v416_v36, -1e+30  ;;  %442 = vmax.xlane.f32.xlu0 %v441_v37 }
 0x37b   :  { %v438_v38 = vsel %vm437_vm14, %v435_v24, -inf }
 0x37c   :  { %439 = vmax.xlane.f32.xlu1 %v438_v38 }
 0x38d   :  { %460 = vrot.lane.b32.xlu1 %v297_v41, %s1297_s30 }
 0x390   :  { %458 = vrot.lane.b32.xlu0 %v296_v48, %s1297_s30 }
 0x391   :  { %652 = vrot.lane.b32.xlu1 %v1362_v19, %s1296_s2 }
 0x394   :  { %650 = vrot.lane.b32.xlu0 %v1366_v20, %s1296_s2  ;;  %v1298_v20 = vmov 1.0  }
 0x395   :  { %648 = vrot.lane.b32.xlu1 %v1370_v21, %s1296_s2 }
 0x398   :  { %646 = vrot.lane.b32.xlu0 %v1374_v22, %s1296_s2 }
 0x399   :  { %659 = vrot.lane.b32.xlu1 %v1474_v11, %s1296_s2 }
 0x403   :  { %v443_v25 = vpop.xlane.xlu0 %442 }
 0x404   :  { %v445_v46 = vsub.f32 %v436_v33, %v443_v25  ;;  %v68_v25 = vld [vmem:[#allocation7 + $0x58] sm:$0xff] }
 0x405   :  { %v440_v27 = vpop.xlane.xlu1 %439 }
 0x406   :  { %v444_v52 = vsub.f32 %v435_v24, %v440_v27  ;;  %v448_v57 = vmul.f32 1.442695, %v445_v46  ;;  %v65_v46 = vld [vmem:[#allocation7 + $0x40] sm:$0xff]  ;;  %v62_v27 = vld [vmem:[#allocation7 + $0x28] sm:$0xff] }
 0x407   :  { %v459_v19 = vpop.permute.xlu0 %458 }
 0x408   :  { %v446_v39 = vmul.f32 1.442695, %v444_v52  ;;  %v59_v52 = vld [vmem:[#allocation7 + $0x10] sm:$0xff] }
 0x409   :  { %v461_v44 = vpop.permute.xlu1 %460 }
 0x40a   :  { %1185 = vpow2.f32 %v446_v39  ;;  %1109 = vmatprep.subr.mxu0 %v461_v44 }
 0x40b   :  { %1187 = vpow2.f32 %v448_v57  ;;  %1110 = vmatpush3.msra.mxu0 %v461_v44  ;;  %v651_v35 = vpop.permute.xlu0 %650  ;;  %v783_v57 = vsub.s32 2, %v1340_v5 }
 0x40c   :  { %1111 = vmatprep.subr.mxu0 %v459_v19 }
 0x40d   :  { %1112 = vmatpush3.msra.mxu0 %v459_v19  ;;  %v653_v34 = vpop.permute.xlu1 %652  ;;  %v784_v39 = vrot.slane %v1342_v6, %v783_v57 }
 0x40e   :  { %1116 = vmatprep.subr.msk.mxu0 %vm1386_vm1, %v1298_v20  ;;  %1135 = vmatprep.subr.mxu1 %v653_v34 }
 0x40f   :  { %1136 = vmatpush3.msra.mxu1 %v653_v34  ;;  %v647_v43 = vpop.permute.xlu0 %646 }
 0x410   :  { %1137 = vmatprep.subr.mxu1 %v651_v35 }
 0x411   :  { %v649_v40 = vpop.permute.xlu1 %648  ;;  %1138 = vmatpush3.msra.mxu1 %v651_v35 }
 0x412   :  { %1139 = vmatprep.subr.mxu1 %v649_v40 }
 0x413   :  { %1140 = vmatpush3.msra.mxu1 %v649_v40 }
 0x414   :  { %1141 = vmatprep.subr.mxu1 %v647_v43 }
 0x415   :  { %1142 = vmatpush3.msra.mxu1 %v647_v43  ;;  %v660_v54 = vpop.permute.xlu1 %659 }
 0x416   :  { %1157 = vmatprep.subr.mxu1 %v68_v25 }
 0x417   :  { %v1186_v21 = vpop.eup %1185 }
 0x418   :  { %v1188_v22 = vpop.eup %1187  ;;  %1113 = vmatprep.mubr.msk.f32.mxu0 %vm437_vm14, %v1186_v21 }
 0x419   :  { %1114 = vmatmul.mubr.msk.f32.vlgmr.msra.gmra.mxu0 %vm437_vm14, %v1188_v22 }
 0x41a   :  { %1117 = vmatpush3.msk.msra.mxu0 %vm1386_vm1, %v1298_v20  ;;  %1132 = vmatprep.mubr.msk.f32.mxu0 %vm437_vm14, %v1186_v21 }
 0x41b   :  { %1118 = vmatprep.subr.msk.mxu0 %vm1390_vm2, %v1298_v20 }
 0x41c   :  { %1119 = vmatpush3.msk.msra.mxu0 %vm1390_vm2, %v1298_v20 }
 0x41d   :  { %1120 = vmatprep.subr.msk.mxu0 %vm1420_vm5, %v1298_v20 }
 0x41e   :  { %1121 = vmatpush3.msk.msra.mxu0 %vm1420_vm5, %v1298_v20 }
 0x41f   :  { %1122 = vmatprep.subr.msk.mxu0 %vm1399_vm3, %v1298_v20 }
 0x420   :  { %1123 = vmatpush3.msk.msra.mxu0 %vm1399_vm3, %v1298_v20 }
 0x421   :  { %1124 = vmatprep.subr.msk.mxu0 %vm1443_vm7, %v1298_v20 }
 0x422   :  { %1125 = vmatpush3.msk.msra.mxu0 %vm1443_vm7, %v1298_v20 }
 0x423   :  { %1126 = vmatprep.subr.msk.mxu0 %vm1410_vm4, %v1298_v20 }
 0x424   :  { %1127 = vmatpush3.msk.msra.mxu0 %vm1410_vm4, %v1298_v20 }
 0x425   :  { %1128 = vmatprep.subr.msk.mxu0 %vm1458_vm8, %v1298_v20 }
 0x426   :  { %1129 = vmatpush3.msk.msra.mxu0 %vm1458_vm8, %v1298_v20 }
 0x427   :  { %1130 = vmatprep.subr.msk.mxu0 %vm1431_vm6, %v1298_v20 }
 0x428   :  { %1131 = vmatpush3.msk.msra.mxu0 %vm1431_vm6, %v1298_v20 }
 0x429   :  { %1133 = vmatmul.mubr.msk.f32.vlgmr.msra.gmra.mxu0 %vm437_vm14, %v1188_v22  ;;  %1146 = vmatprep.subr.mxu0 %v67_v14 }
 0x42a   :  { %1147 = vmatpush3.msra.mxu0 %v67_v14 }
 0x42b   :  { %1148 = vmatprep.subr.mxu0 %v64_v16 }
 0x42c   :  { %1149 = vmatpush3.msra.mxu0 %v64_v16 }
 0x42d   :  { %1150 = vmatprep.subr.mxu0 %v61_v17 }
 0x42e   :  { %1151 = vmatpush3.msra.mxu0 %v61_v17 }
 0x42f   :  { %1152 = vmatprep.subr.mxu0 %v58_v18 }
 0x430   :  { %1153 = vmatpush3.msra.mxu0 %v58_v18 }
 0x4d9   :  { %v1115_v45 = vpop.f32.mrf.mxu0 }
 0x4db   :  { %v554_v51 = vpop.f32.mrf.mxu0 }
 0x4e9   :  { %v1134_v55 = vpop.f32.mrf.mxu0 }
 0x4ea   :  { %1189 = vrcp.f32 %v1134_v55 }
 0x4eb   :  { %v629_v49 = vpop.f32.mrf.mxu0 }
 0x4ec   :  { %1191 = vrcp.f32 %v629_v49 }
 0x4f7   :  { %v1190_v11 = vpop.eup %1189 }
 0x4f8   :  { %v641_v47 = vmul.f32 %v1190_v11, %v1115_v45 }
 0x4f9   :  { %v1192_v50 = vpop.eup %1191 }
 0x4fa   :  { %v640_v42 = vmul.f32 %v1192_v50, %v554_v51 }
 0x4fc   :  { %1143 = vmatprep.mubr.msk.f32.mxu1 %vm69_vm0, %v640_v42 }
 0x4fd   :  { %1144 = vmatmul.mubr.msk.f32.vlgmr.msra.gmra.mxu1 %vm69_vm0, %v641_v47 }
 0x4fe   :  { %1158 = vmatpush3.xpose.msra.mxu1 %v68_v25 }
 0x4ff   :  { %1159 = vmatprep.subr.mxu1 %v65_v46 }
 0x502   :  { %1160 = vmatpush3.xpose.msra.mxu1 %v65_v46 }
 0x503   :  { %1161 = vmatprep.subr.mxu1 %v62_v27 }
 0x506   :  { %1162 = vmatpush3.xpose.msra.mxu1 %v62_v27 }
 0x507   :  { %1163 = vmatprep.subr.mxu1 %v59_v52 }
 0x50a   :  { %1164 = vmatpush3.xpose.msra.mxu1 %v59_v52 }
 0x5bd   :  { %v1145_v53 = vpop.f32.mrf.mxu1 }
 0x5be   :  { %v740_v56 = vadd.f32 %v1145_v53, %v660_v54 }
 0x5bf   :  { %v734_v58 = vpop.f32.mrf.mxu1 }
 0x5c0   :  { %v1604_v59 = vadd.f32 %v740_v56, %v1334_v1  ;;  %v735_v60 = vadd.f32 %v734_v58, %v660_v54 }
 0x5c2   :  { %v1607_v61 = vadd.f32 %v735_v60, %v1332_v0  ;;  %v748_v62 = vsel %vm69_vm0, %v1604_v59, 0.0 }
 0x5c3   :  { %749 = vadd.xlane.f32.xlu1 %v748_v62  ;;  %v886_v62 = vsub.s32 3, %v1340_v5 }
 0x5c4   :  { %v745_v63 = vsel %vm69_vm0, %v1607_v61, 0.0 }
 0x5c5   :  { %746 = vadd.xlane.f32.xlu0 %v745_v63  ;;  %v887_v63 = vrot.slane %v1342_v6, %v886_v62 }
 0x5d4   :  { %776 = vrot.lane.b32.xlu1 %v1346_v8, %s1296_s2 }
 0x64c   :  { %v750_v2 = vpop.xlane.xlu1 %749 }
 0x64d   :  { %v752_v3 = vmul.f32 0.03125, %v750_v2 }
 0x64e   :  { %v747_v4 = vpop.xlane.xlu0 %746 }
 0x64f   :  { %v751_v1 = vmul.f32 0.03125, %v747_v4  ;;  %v754_v7 = vsub.f32 %v1604_v59, %v752_v3 }
 0x650   :  { %v777_v33 = vpop.permute.xlu1 %776 }
 0x651   :  { %v753_v0 = vsub.f32 %v1607_v61, %v751_v1  ;;  %v756_v12 = vmul.f32 %v754_v7, %v754_v7 }
 0x653   :  { %v755_v9 = vmul.f32 %v753_v0, %v753_v0  ;;  %v760_v13 = vsel %vm69_vm0, %v756_v12, 0.0 }
 0x655   :  { %v757_v10 = vsel %vm69_vm0, %v755_v9, 0.0 }
 0x656   :  { %758 = vadd.xlane.f32.xlu0 %v757_v10 }
 0x65a   :  { %761 = vadd.xlane.f32.xlu0 %v760_v13 }
 0x670   :  { %771 = vrot.lane.b32.xlu0 %v1346_v8, %s1297_s30 }
 0x6df   :  { %v759_v23 = vpop.xlane.xlu0 %758 }
 0x6e0   :  { %v763_v15 = vmul.f32 0.03125, %v759_v23 }
 0x6e2   :  { %v765_v26 = vadd.f32 1e-05, %v763_v15 }
 0x6e3   :  { %v762_v28 = vpop.xlane.xlu0 %761 }
 0x6e4   :  { %1193 = vrsqrt.f32 %v765_v26  ;;  %v764_v29 = vmul.f32 0.03125, %v762_v28 }
 0x6e6   :  { %v766_v30 = vadd.f32 1e-05, %v764_v29 }
 0x6e7   :  { %v772_v31 = vpop.permute.xlu0 %771 }
 0x6e8   :  { %1195 = vrsqrt.f32 %v766_v30 }
 0x6f1   :  { %v1194_v8 = vpop.eup %1193 }
 0x6f2   :  { %v769_v32 = vmul.f32 %v1194_v8, %v753_v0 }
 0x6f4   :  { %v774_v36 = vmul.f32 %v772_v31, %v769_v32 }
 0x6f5   :  { %v1196_v37 = vpop.eup %1195 }
 0x6f6   :  { %v770_v24 = vmul.f32 %v1196_v37, %v754_v7  ;;  %v779_v38 = vadd.f32 %v777_v33, %v774_v36 }
 0x6f8   :  { %v775_v41 = vmul.f32 %v772_v31, %v770_v24  ;;  %1154 = vmatprep.mubr.msk.f32.mxu0 %vm69_vm0, %v779_v38 }
 0x6fa   :  { %v780_v48 = vadd.f32 %v777_v33, %v775_v41 }
 0x6fc   :  { %1155 = vmatmul.mubr.msk.f32.vlgmr.msra.gmra.mxu0 %vm69_vm0, %v780_v48 }
 0x7bc   :  { %v1156_v44 = vpop.f32.mrf.mxu0 }
 0x7bd   :  { %v863_v19 = vadd.f32 %v1156_v44, %v784_v39 }
 0x7be   :  { %v857_v20 = vpop.f32.mrf.mxu0 }
 0x7bf   :  { %v869_v21 = vmul.f32 0.044715, %v863_v19  ;;  %v858_v22 = vadd.f32 %v857_v20, %v784_v39  ;;  %v867_v56 = vmul.f32 0.5, %v863_v19 }
 0x7c1   :  { %v871_v34 = vmul.f32 %v869_v21, %v863_v19  ;;  %v868_v35 = vmul.f32 0.044715, %v858_v22  ;;  %v866_v54 = vmul.f32 0.5, %v858_v22 }
 0x7c3   :  { %v873_v40 = vmul.f32 %v871_v34, %v863_v19  ;;  %v870_v43 = vmul.f32 %v868_v35, %v858_v22 }
 0x7c5   :  { %v875_v45 = vadd.f32 %v873_v40, %v863_v19  ;;  %v872_v51 = vmul.f32 %v870_v43, %v858_v22 }
 0x7c7   :  { %v874_v55 = vadd.f32 %v872_v51, %v858_v22  ;;  %v877_v49 = vmul.f32 0.7978846, %v875_v45 }
 0x7c9   :  { %v876_v11 = vmul.f32 0.7978846, %v874_v55  ;;  %1197 = vtanh.f32 %v877_v49 }
 0x7cb   :  { %1199 = vtanh.f32 %v876_v11 }
 0x7d6   :  { %v1198_v50 = vpop.eup %1197 }
 0x7d7   :  { %v881_v47 = vadd.f32 1.0, %v1198_v50 }
 0x7d8   :  { %v1200_v42 = vpop.eup %1199 }
 0x7d9   :  { %v880_v53 = vadd.f32 1.0, %v1200_v42  ;;  %v883_v60 = vmul.f32 %v881_v47, %v867_v56 }
 0x7db   :  { %v882_v58 = vmul.f32 %v880_v53, %v866_v54 }
 0x7dd   :  { %1165 = vmatprep.mubr.f32.mxu1 %v882_v58 }
 0x7de   :  { %1166 = vmatmul.mubr.f32.vlgmr.msra.gmra.mxu1 %v883_v60 }
 0x89e   :  { %v1167_v2 = vpop.f32.mrf.mxu1 }
 0x89f   :  { %v960_v3 = vadd.f32 %v1167_v2, %v887_v63 }
 0x8a0   :  { %v954_v4 = vpop.f32.mrf.mxu1 }
 0x8a1   :  { %v964_v1 = vadd.f32 %v960_v3, %v1604_v59  ;;  %v955_v7 = vadd.f32 %v954_v4, %v887_v63 }
 0x8a3   :  { %966 = vst.msk [vmem:[#allocation8 + $0x8] sm:$0xff] %vm69_vm0, %v964_v1  ;;  %v963_v0 = vadd.f32 %v955_v7, %v1607_v61 }
 0x8a5   :  { %965 = vst.msk [vmem:[#allocation8] sm:$0xff] %vm69_vm0, %v963_v0 }
 0x8a6   :  { %1272 = shalt.err (!%p1269_p5)
}
 0x8a7   :  { %978 = dma.vmem_to_hbm [thread:$0]  %s973_s5, 256, %s1640_s3, [#allocation4], %s1289_s20, %s1289_s20, %s1290_s21  }
 0x8a8   :  { %1285 = dma.done.wait [#allocation4], 256  }
 0x8a9   :  { %1286 = vsyncadd [#allocation4], 4294967040 }
 0x8aa   :  { %982 = vsyncpa [#allocation3], 1 }
 0x8ab   :  { %983 = vsyncpa [#allocation6], 1 }
 0x8ac   :  { %984 = vsyncpa [#allocation4], 1 }

</bundles_post_ra>
